<compile_context>
chip_gen: v5e
topology: v5e:2x2
jax: 0.10.0
libtpu: 0.0.40
codegen_flags: <defaults>
</compile_context>

<pallas_src>
import functools

import jax
import jax.numpy as jnp
import numpy as np
from jax.experimental import pallas as pl
from jax.experimental.pallas import tpu as pltpu

# ----------------------------- module config --------------------------------
NUM_CLASSES = 10
HIDDEN = 128            # hidden_size; one full (8,128) lane-dense tile per batch of 8
DROPOUT_PROB = 0.1      # > 0  =>  CFG embedding row exists at index NUM_CLASSES
BATCH = 8
VOCAB = NUM_CLASSES + 1


# -------------------------------- kernel ------------------------------------
def label_embed_kernel(mode_ref, labels_ref, rand_ref, force_ref, table_ref,
                       out_ref, *, num_classes, dropout_prob):
    """Single invocation; everything resident in SMEM/VMEM.

    mode_ref:   SMEM (1,)   int32   0 = no drop, 1 = random drop, 2 = forced drop
    labels_ref: VMEM (B, 1) int32   class labels
    rand_ref:   VMEM (B, 1) float32 uniform [0,1) draws (token_drop's torch.rand)
    force_ref:  VMEM (B, 1) int32   force_drop_ids (zeros if unused)
    table_ref:  VMEM (V, H) float32 embedding table (V = num_classes + 1)
    out_ref:    VMEM (B, H)
    """
    mode = mode_ref[0]

    labels = labels_ref[...]                                   # (B, 1) int32
    rand_drop = rand_ref[...] < dropout_prob                   # (B, 1) bool
    force_drop = force_ref[...] == 1                           # (B, 1) bool
    drop = ((mode == 1) & rand_drop) | ((mode == 2) & force_drop)
    labels = jnp.where(drop, num_classes, labels)              # (B, 1) int32

    # One-hot gather on the MXU: (B, V) @ (V, H) -> (B, H).
    batch = labels.shape[0]
    vocab = table_ref.shape[0]
    col_ids = jax.lax.broadcasted_iota(jnp.int32, (batch, vocab), 1)
    onehot = (col_ids == labels).astype(jnp.float32)           # (B, V)
    out = jnp.dot(onehot, table_ref[...].astype(jnp.float32),
                  preferred_element_type=jnp.float32)          # (B, H)
    out_ref[...] = out.astype(out_ref.dtype)


# -------------------------------- wrapper ------------------------------------
def label_embedder_forward(labels, embedding_table, *, num_classes,
                           dropout_prob, train, force_drop_ids=None,
                           rng_key=None):
    """Mirrors LabelEmbedder.forward(labels, train, force_drop_ids)."""
    B = labels.shape[0]
    V, H = embedding_table.shape

    use_dropout = dropout_prob > 0
    apply_drop = (train and use_dropout) or (force_drop_ids is not None)

    if not apply_drop:
        mode = 0
        rand_u = jnp.zeros((B, 1), jnp.float32)
        force = jnp.zeros((B, 1), jnp.int32)
    elif force_drop_ids is not None:
        mode = 2
        rand_u = jnp.zeros((B, 1), jnp.float32)
        force = force_drop_ids.astype(jnp.int32).reshape(B, 1)
    else:
        mode = 1
        assert rng_key is not None, "rng_key required for random label dropout"
        rand_u = jax.random.uniform(rng_key, (B,), jnp.float32).reshape(B, 1)
        force = jnp.zeros((B, 1), jnp.int32)

    mode_arr = jnp.asarray([mode], jnp.int32)
    labels2d = labels.astype(jnp.int32).reshape(B, 1)

    kernel = functools.partial(label_embed_kernel,
                               num_classes=num_classes,
                               dropout_prob=float(dropout_prob))
    vmem = pl.BlockSpec(memory_space=pltpu.MemorySpace.VMEM)
    return pl.pallas_call(
        kernel,
        out_shape=jax.ShapeDtypeStruct((B, H), embedding_table.dtype),
        in_specs=[
            pl.BlockSpec(memory_space=pltpu.MemorySpace.SMEM),  # mode scalar
            vmem,                                               # labels (B, 1)
            vmem,                                               # rand_u (B, 1)
            vmem,                                               # force  (B, 1)
            vmem,                                               # table  (V, H)
        ],
        out_specs=vmem,
    )(mode_arr, labels2d, rand_u, force, embedding_table)


# ---------------------------- pure-JAX reference ------------------------------
def ref_forward(labels, embedding_table, *, num_classes, dropout_prob, train,
                force_drop_ids=None, rng_key=None):
    use_dropout = dropout_prob > 0
    if (train and use_dropout) or (force_drop_ids is not None):
        if force_drop_ids is None:
            drop = jax.random.uniform(rng_key, (labels.shape[0],),
                                      jnp.float32) < dropout_prob
        else:
            drop = force_drop_ids == 1
        labels = jnp.where(drop, num_classes, labels)
    return embedding_table[labels]


# ---------------------------------- main --------------------------------------
if __name__ == "__main__":
    key = jax.random.PRNGKey(0)
    k_tbl, k_lab, k_drop = jax.random.split(key, 3)

    # nn.Embedding default init ~ N(0, 1); +1 CFG row since dropout_prob > 0.
    table = jax.random.normal(k_tbl, (VOCAB, HIDDEN), jnp.float32)
    labels = jax.random.randint(k_lab, (BATCH,), 0, NUM_CLASSES, jnp.int32)
    force_ids = jnp.array([1, 0, 1, 0, 0, 0, 1, 0], jnp.int32)

    cases = [
        dict(train=True, force_drop_ids=None, rng_key=k_drop),       # random CFG drop
        dict(train=False, force_drop_ids=None, rng_key=None),        # eval: no drop
        dict(train=False, force_drop_ids=force_ids, rng_key=None),   # forced drop
    ]
    for cfg in cases:
        out = label_embedder_forward(labels, table, num_classes=NUM_CLASSES,
                                     dropout_prob=DROPOUT_PROB, **cfg)
        out = jax.block_until_ready(out)
        ref = ref_forward(labels, table, num_classes=NUM_CLASSES,
                          dropout_prob=DROPOUT_PROB, **cfg)
        np.testing.assert_allclose(np.asarray(out), np.asarray(ref),
                                   rtol=1e-5, atol=1e-6)

    print("KERNEL_OK")
</pallas_src>

<mosaic_0001>
module attributes {stable_mosaic.version = 11 : i64} {
  func.func @label_embed_kernel(%arg0: memref<1xi32, #tpu.memory_space<smem>>, %arg1: memref<8x1xi32, #tpu.memory_space<vmem>>, %arg2: memref<8x1xf32, #tpu.memory_space<vmem>>, %arg3: memref<8x1xi32, #tpu.memory_space<vmem>>, %arg4: memref<11x128xf32, #tpu.memory_space<vmem>>, %arg5: memref<8x128xf32, #tpu.memory_space<vmem>>) attributes {dimension_semantics = [], scalar_prefetch = 0 : i64, scratch_operands = 0 : i64, tpu.core_type = #tpu.core_type<tc>} {
    %c0 = arith.constant 0 : index
    %0 = memref.load %arg0[%c0] : memref<1xi32, #tpu.memory_space<smem>>
    %c0_0 = arith.constant 0 : index
    %c0_1 = arith.constant 0 : index
    %1 = vector.load %arg1[%c0_0, %c0_1] : memref<8x1xi32, #tpu.memory_space<vmem>>, vector<8x1xi32>
    %c0_2 = arith.constant 0 : index
    %c0_3 = arith.constant 0 : index
    %2 = vector.load %arg2[%c0_2, %c0_3] : memref<8x1xf32, #tpu.memory_space<vmem>>, vector<8x1xf32>
    %cst = arith.constant 1.000000e-01 : f32
    %3 = vector.broadcast %cst : f32 to vector<8x1xf32>
    %4 = arith.cmpf olt, %2, %3 : vector<8x1xf32>
    %c0_4 = arith.constant 0 : index
    %c0_5 = arith.constant 0 : index
    %5 = vector.load %arg3[%c0_4, %c0_5] : memref<8x1xi32, #tpu.memory_space<vmem>>, vector<8x1xi32>
    %c1_i32 = arith.constant 1 : i32
    %6 = vector.broadcast %c1_i32 : i32 to vector<8x1xi32>
    %7 = arith.cmpi eq, %5, %6 : vector<8x1xi32>
    %c1_i32_6 = arith.constant 1 : i32
    %8 = arith.cmpi eq, %0, %c1_i32_6 : i32
    %9 = vector.broadcast %8 : i1 to vector<8x1xi1>
    %10 = arith.andi %9, %4 : vector<8x1xi1>
    %c2_i32 = arith.constant 2 : i32
    %11 = arith.cmpi eq, %0, %c2_i32 : i32
    %12 = vector.broadcast %11 : i1 to vector<8x1xi1>
    %13 = arith.andi %12, %7 : vector<8x1xi1>
    %14 = arith.ori %10, %13 : vector<8x1xi1>
    %c10_i32 = arith.constant 10 : i32
    %15 = vector.broadcast %c10_i32 : i32 to vector<8x1xi32>
    %16 = arith.select %14, %15, %1 : vector<8x1xi1>, vector<8x1xi32>
    %17 = tpu.iota {dimensions = array<i32: 1>} : vector<8x11xi32>
    %18 = vector.broadcast %16 : vector<8x1xi32> to vector<8x11xi32>
    %19 = arith.cmpi eq, %17, %18 : vector<8x11xi32>
    %20 = arith.extui %19 : vector<8x11xi1> to vector<8x11xi32>
    %21 = arith.sitofp %20 : vector<8x11xi32> to vector<8x11xf32>
    %c0_7 = arith.constant 0 : index
    %c0_8 = arith.constant 0 : index
    %22 = vector.load %arg4[%c0_7, %c0_8] : memref<11x128xf32, #tpu.memory_space<vmem>>, vector<11x128xf32>
    %cst_9 = arith.constant dense<0.000000e+00> : vector<8x128xf32>
    %23 = tpu.matmul %21, %22, %cst_9 {dimension_numbers = #tpu.dot_dimension_numbers<[1], [0], [0], [1], [0, 0, 1, 1], [], []>} : vector<8x11xf32>, vector<11x128xf32>, vector<8x128xf32> -> vector<8x128xf32>
    %c0_10 = arith.constant 0 : index
    %c0_11 = arith.constant 0 : index
    %24 = vector.load %arg5[%c0_10, %c0_11] : memref<8x128xf32, #tpu.memory_space<vmem>>, vector<8x128xf32>
    tpu.vector_store %arg5[%c0_10, %c0_11], %23 {strides = array<i32>} : memref<8x128xf32, #tpu.memory_space<vmem>>, vector<8x128xf32>,
    return
  }
}

</mosaic_0001>

<bundles_post_ra>
// kernel: tpu_custom_call.1
= control target key start
LH: loop header
LB: loop body
LE: loop exit
PB: predicated region body
PF: predicated region fallthrough
CT: control target
= control target key end

     0   :  { %v128_v1 = vmov 0   ;;  %vm54_vm0 = vcmask 1042432   ;;  %s185_s0 = inlined_call_operand.<no memory space> [shape: s32[1], index: 0, kind: input, shape index: {}]   ;;  %s186_s1 = inlined_call_operand.vmem [shape: s32[8,1], index: 1, kind: input, shape index: {}]   ;;  %s187_s2 = inlined_call_operand.vmem [shape: f32[8,1], index: 2, kind: input, shape index: {}]   ;;  %s188_s3 = inlined_call_operand.vmem [shape: s32[8,1], index: 3, kind: input, shape index: {}]   ;;  %s189_s4 = inlined_call_operand.vmem [shape: f32[11,128], index: 4, kind: input, shape index: {}]   ;;  %s190_s5 = inlined_call_operand.hbm [shape: f32[8,128], index: 5, kind: output, shape index: {}]  }
   0x1   :  { %v24_v0 = vld [vmem:[%s187_s2] sm:$0xff]  ;;  %p28_p0 = scmp.eq.s32.totalorder %s185_s0, 1  ;;  %p33_p1 = scmp.eq.s32.totalorder %s185_s0, 2  ;;  %101 = vset.pattern.permute.xlu0 %v128_v1  ;;  %v49_v3 = vld [vmem:[%s189_s4 + $0x8] sm:$0x7] }
   0x2   :  { %v26_v2 = vld [vmem:[%s188_s3] sm:$0xff]  ;;  %96 = vmatpush.msk.msra.mxu0 %vm54_vm0, %v49_v3 }
   0x3   :  { %s29_s2 = scalar_select %p28_p0, 1, 0 }
   0x4   :  { %11 = vsyncpa [#allocation4], 0  ;;  %vm25_vm1 = vcmp.lt.f32.partialorder %v24_v0, 0.1  ;;  %s34_s28 = scalar_select %p33_p1, 1, 0  ;;  %v40_v9 = vlaneseq }
   0x5   :  { %vm27_vm2 = vcmp.eq.s32.totalorder %v26_v2, 1  ;;  %v30_v4 = vstv %s29_s2  ;;  %v23_v6 = vld [vmem:[%s186_s1] sm:$0xff]  ;;  %vm50_vm8 = vcmask 89088   ;;  %v129_v12 = vmov 0.0   ;;  %s130_s1 = smov [#allocation3]   ;;  %s86_s9 = sshll.u32 %s190_s5, 4  ;;  %s87_s9 = int_to_ptr.hbm [resolvable:$true] %s86_s9 }
   0x6   :  { %vm31_vm3 = vcmp.eq.s32.totalorder %v30_v4, 1  ;;  %v35_v5 = vstv %s34_s28  ;;  %v48_v8 = vld [vmem:[%s189_s4] sm:$0xff]  ;;  %v41_v10 = vand.u32 127, %v40_v9  ;;  %s84_s6 = sshll.u32 %s130_s1, 4  ;;  %s85_s6 = int_to_ptr.vmem [resolvable:$true] %s84_s6 }
   0x7   :  { %vm32_vm4 = vmand %vm31_vm3, %vm25_vm1  ;;  %vm36_vm5 = vcmp.eq.s32.totalorder %v35_v5, 1  ;;  %73 = vmatpush.msra.mxu0 %v48_v8 }
   0x8   :  { %vm37_vm6 = vmand %vm36_vm5, %vm27_vm2 }
   0x9   :  { %vm38_vm7 = vmor %vm32_vm4, %vm37_vm6 }
   0xa   :  { %v39_v7 = vsel %vm38_vm7, 10, %v23_v6 }
   0xb   :  { %43 = vperm.xlu0 %101, %v39_v7  }
  0x7d   :  { %v44_v11 = vpop.permute.xlu0 %43 }
  0x7e   :  { %vm45_vm9 = vcmp.eq.s32.totalorder %v41_v10, %v44_v11 }
  0x7f   :  { %v95_v13 = vsel %vm45_vm9, 1.0, %v129_v12 }
  0x80   :  { %97 = vmatmul.msk.f32.vlgmr.msra.gmra.mxu0 %vm50_vm8, %v95_v13 }
  0xfd   :  { %v75_v14 = vpop.f32.mrf.mxu0 }
  0xfe   :  { %78 = vst [vmem:[#allocation3] sm:$0xff] %v75_v14 }
  0xff   :  { %89 = dma.vmem_to_hbm [thread:$0]  %s85_s6, 128, %s87_s9, [#allocation4]  }
 0x100   :  { %126 = dma.done.wait [#allocation4], 128  }
 0x101   :  { %127 = vsyncadd [#allocation4], 4294967168 }
 0x102   :  { %94 = vsyncpa [#allocation4], 1 }

</bundles_post_ra>
